<compile_context>
chip_gen: v5e
topology: v5e:2x2
jax: 0.10.0
libtpu: 0.0.40
codegen_flags: <defaults>
</compile_context>

<pallas_src>
import jax
import jax.numpy as jnp
from jax.experimental import pallas as pl
from jax.experimental.pallas import tpu as pltpu


# ----------------------------------------------------------------------------
# Pallas kernel: one lane-dense pixel tile
#   O(C2, TM) = SiLU( W_folded(C2, K) @ X(K, TM) + bias(C2, 1) )
# ----------------------------------------------------------------------------
def _focus_kernel(w_ref, b_ref, x_ref, o_ref):
    # bf16 operands, f32 accumulation on the MXU.
    y = jnp.dot(w_ref[...], x_ref[...], preferred_element_type=jnp.float32)
    y = y + b_ref[...]                                   # folded BN bias (C2,1)
    o_ref[...] = (y * jax.nn.sigmoid(y)).astype(o_ref.dtype)   # SiLU (EUP)


# ----------------------------------------------------------------------------
# Tile sizing: biggest lane tile that fits a conservative scoped-VMEM budget
# (safe on v5e 16 MiB / v6e 32 MiB / v7x 32 MiB defaults), 512-lane aligned,
# preferring an exact divisor of the pixel count to avoid a padded edge tile.
# ----------------------------------------------------------------------------
def _choose_tile(m_pix, k, c2, *, in_itemsize=2, out_itemsize=2,
                 vmem_budget_bytes=12 * 1024 * 1024, tm_cap=8192):
    if m_pix <= 128:
        return m_pix
    per_lane = 2 * (k * in_itemsize + c2 * out_itemsize)   # double-buffered x/out
    tm = min(tm_cap, vmem_budget_bytes // per_lane, m_pix)
    align = 512 if tm >= 512 else 128
    tm = max(align, (tm // align) * align)
    cand = tm
    while cand >= max(align, tm // 2):      # look for a divisor within 2x
        if m_pix % cand == 0:
            return cand
        cand -= align
    return tm                                # padded edge tile (safe: OOB lanes dropped)


# ----------------------------------------------------------------------------
# Host wrapper (keeps the PyTorch module's NCHW in / NCHW out semantics)
# ----------------------------------------------------------------------------
def focus_forward(x_nchw, w_conv, bn_scale, bn_bias, *, out_dtype=jnp.bfloat16,
                  tm=None):
    """Focus forward.

    x_nchw   : (N, C1, H, W) float32, H and W even.
    w_conv   : (C2, 4*C1) float32   -- 1x1 conv weight (kernel dims squeezed),
                                       bias-free as in the PyTorch module.
    bn_scale : (C2,) float32        -- gamma / sqrt(var + eps)   (eval-mode BN)
    bn_bias  : (C2,) float32        -- beta - mean * bn_scale
    returns  : (N, C2, H//2, W//2) in `out_dtype` (bf16 by default).
    """
    N, C1, H, W = x_nchw.shape
    C2 = w_conv.shape[0]
    Ho, Wo = H // 2, W // 2
    K = 4 * C1
    Mpix = Ho * Wo

    # ---- host-side layout plumbing: one gather/cast pass, NO transposes -----
    # PyTorch Focus channel order: [even/even, odd/even, even/odd, odd/odd].
    xb = x_nchw.astype(jnp.bfloat16)
    xc = jnp.concatenate(
        [xb[:, :, ::2, ::2],      # even rows, even cols
         xb[:, :, 1::2, ::2],     # odd rows,  even cols
         xb[:, :, ::2, 1::2],     # even rows, odd cols
         xb[:, :, 1::2, 1::2]],   # odd rows,  odd cols
        axis=1)                                              # (N, 4*C1, Ho, Wo)
    x_km = xc.reshape(N, K, Mpix)          # free reshape, pixels on the lane axis

    # Fold BN scale into the weight rows; only the bias add stays in-kernel.
    w_folded = (w_conv * bn_scale[:, None]).astype(jnp.bfloat16)     # (C2, K)
    bias = bn_bias.reshape(C2, 1).astype(jnp.float32)                # (C2, 1)

    out_itemsize = jnp.dtype(out_dtype).itemsize
    if tm is None:
        tm = _choose_tile(Mpix, K, C2, out_itemsize=out_itemsize)
    tm = min(tm, Mpix)
    grid = (N, pl.cdiv(Mpix, tm))

    flops = 2 * N * Mpix * K * C2 + 4 * N * Mpix * C2       # matmul + bias/SiLU
    bytes_accessed = (x_km.size * 2 + w_folded.size * 2 + bias.size * 4
                      + N * C2 * Mpix * out_itemsize)

    out = pl.pallas_call(
        _focus_kernel,
        out_shape=jax.ShapeDtypeStruct((N, C2, Mpix), out_dtype),
        grid_spec=pltpu.PrefetchScalarGridSpec(
            num_scalar_prefetch=0,
            grid=grid,
            in_specs=[
                pl.BlockSpec((C2, K), lambda n, j: (0, 0)),          # weight (resident)
                pl.BlockSpec((C2, 1), lambda n, j: (0, 0)),          # BN bias (resident)
                pl.BlockSpec((None, K, tm), lambda n, j: (n, 0, j)),  # activations
            ],
            out_specs=pl.BlockSpec((None, C2, tm), lambda n, j: (n, 0, j)),
        ),
        compiler_params=pltpu.CompilerParams(
            dimension_semantics=("parallel", "parallel")),
        cost_estimate=pl.CostEstimate(
            flops=flops, transcendentals=N * Mpix * C2,
            bytes_accessed=bytes_accessed),
    )(w_folded, bias, x_km)

    # (N, C2, Ho*Wo) is already channel-major: free reshape to NCHW, no copy.
    return out.reshape(N, C2, Ho, Wo)


# ----------------------------------------------------------------------------
# Deterministic synthetic parameters (BN folded, eval mode)
# ----------------------------------------------------------------------------
def make_params(key, c1, c2):
    k1, k2, k3, k4, k5 = jax.random.split(key, 5)
    w = 0.2 * jax.random.normal(k1, (c2, 4 * c1), jnp.float32)     # Conv2d 1x1
    gamma = 1.0 + 0.1 * jax.random.normal(k2, (c2,), jnp.float32)
    beta = 0.1 * jax.random.normal(k3, (c2,), jnp.float32)
    mean = 0.1 * jax.random.normal(k4, (c2,), jnp.float32)
    var = 1.0 + 0.1 * jax.random.uniform(k5, (c2,), jnp.float32)
    eps = 1e-5
    scale = gamma / jnp.sqrt(var + eps)
    bias = beta - mean * scale
    return w, scale, bias


# ----------------------------------------------------------------------------
# Pure-JAX f32 reference (exactly the PyTorch Focus math) for a sanity check
# ----------------------------------------------------------------------------
def reference(x_nchw, w_conv, bn_scale, bn_bias):
    xc = jnp.concatenate(
        [x_nchw[:, :, ::2, ::2], x_nchw[:, :, 1::2, ::2],
         x_nchw[:, :, ::2, 1::2], x_nchw[:, :, 1::2, 1::2]], axis=1)
    y = jnp.einsum('nchw,oc->nohw', xc, w_conv)
    y = y * bn_scale[None, :, None, None] + bn_bias[None, :, None, None]
    return y * jax.nn.sigmoid(y)


if __name__ == "__main__":
    key = jax.random.PRNGKey(0)
    kx, kp = jax.random.split(key)

    N, C1, H, W = 2, 4, 16, 16
    C2 = 32

    x = jax.random.normal(kx, (N, C1, H, W), jnp.float32)          # NCHW input
    w, scale, bias = make_params(kp, C1, C2)

    # Mpix = 64 < 128 -> one full-width pixel tile per batch element;
    # grid = (2, 1) = 2 parallel steps (both TCs busy on v7x).
    fwd = jax.jit(focus_forward)
    out = jax.block_until_ready(fwd(x, w, scale, bias))

    ref = jax.block_until_ready(reference(x, w, scale, bias))
    assert out.shape == (N, C2, H // 2, W // 2)
    max_err = float(jnp.max(jnp.abs(out.astype(jnp.float32) - ref)))
    # bf16 matmul operands + bf16 output (f32 accumulation/epilogue) -> loose tol.
    assert jnp.allclose(out.astype(jnp.float32), ref, atol=3e-2, rtol=3e-2), max_err

    print("KERNEL_OK")
</pallas_src>

<mosaic_0001>
module attributes {stable_mosaic.version = 11 : i64} {
  func.func @_focus_kernel(%arg0: i32, %arg1: i32, %arg2: memref<32x16xbf16, #tpu.memory_space<vmem>>, %arg3: memref<32x1xf32, #tpu.memory_space<vmem>>, %arg4: memref<1x16x64xbf16, #tpu.memory_space<vmem>>, %arg5: memref<1x32x64xbf16, #tpu.memory_space<vmem>>) attributes {dimension_semantics = [#tpu.dimension_semantics<parallel>, #tpu.dimension_semantics<parallel>], iteration_bounds = array<i64: 2, 1>, scalar_prefetch = 0 : i64, scratch_operands = 0 : i64, tpu.core_type = #tpu.core_type<tc>, window_params = [{pipeline_mode = #tpu.pipeline_mode<synchronous>, transform_indices = @transform_0, window_bounds = array<i64: 32, 16>}, {pipeline_mode = #tpu.pipeline_mode<synchronous>, transform_indices = @transform_1, window_bounds = array<i64: 32, 1>}, {transform_indices = @transform_2, window_bounds = array<i64: 1, 16, 64>}, {transform_indices = @transform_3, window_bounds = array<i64: 1, 32, 64>}]} {
    %c0 = arith.constant 0 : index
    %c0_0 = arith.constant 0 : index
    %0 = vector.load %arg2[%c0, %c0_0] : memref<32x16xbf16, #tpu.memory_space<vmem>>, vector<32x16xbf16>
    %c0_1 = arith.constant 0 : index
    %c0_2 = arith.constant 0 : index
    %c0_3 = arith.constant 0 : index
    %1 = vector.load %arg4[%c0_1, %c0_2, %c0_3] : memref<1x16x64xbf16, #tpu.memory_space<vmem>>, vector<1x16x64xbf16>
    %2 = vector.shape_cast %1 : vector<1x16x64xbf16> to vector<16x64xbf16>
    %cst = arith.constant dense<0.000000e+00> : vector<32x64xf32>
    %3 = tpu.matmul %0, %2, %cst {dimension_numbers = #tpu.dot_dimension_numbers<[1], [0], [0], [1], [0, 0, 1, 1], [], []>} : vector<32x16xbf16>, vector<16x64xbf16>, vector<32x64xf32> -> vector<32x64xf32>
    %c0_4 = arith.constant 0 : index
    %c0_5 = arith.constant 0 : index
    %4 = vector.load %arg3[%c0_4, %c0_5] : memref<32x1xf32, #tpu.memory_space<vmem>>, vector<32x1xf32>
    %5 = vector.broadcast %4 : vector<32x1xf32> to vector<32x64xf32>
    %6 = arith.addf %3, %5 : vector<32x64xf32>
    %7 = arith.negf %6 : vector<32x64xf32>
    %8 = math.exp %7 : vector<32x64xf32>
    %cst_6 = arith.constant 1.000000e+00 : f32
    %9 = vector.broadcast %cst_6 : f32 to vector<32x64xf32>
    %10 = arith.addf %9, %8 : vector<32x64xf32>
    %11 = arith.divf %9, %10 : vector<32x64xf32>
    %12 = arith.mulf %6, %11 : vector<32x64xf32>
    %13 = arith.truncf %12 : vector<32x64xf32> to vector<32x64xbf16>
    %c0_7 = arith.constant 0 : index
    %c0_8 = arith.constant 0 : index
    %c0_9 = arith.constant 0 : index
    %14 = vector.load %arg5[%c0_7, %c0_8, %c0_9] : memref<1x32x64xbf16, #tpu.memory_space<vmem>>, vector<1x32x64xbf16>
    %15 = vector.shape_cast %14 : vector<1x32x64xbf16> to vector<32x64xbf16>
    %16 = vector.shape_cast %13 : vector<32x64xbf16> to vector<1x32x64xbf16>
    tpu.vector_store %arg5[%c0_7, %c0_8, %c0_9], %16 {strides = array<i32>} : memref<1x32x64xbf16, #tpu.memory_space<vmem>>, vector<1x32x64xbf16>,
    return
  }
  func.func @transform_0(%arg0: i32, %arg1: i32) -> (i32, i32) {
    %c0_i32 = arith.constant 0 : i32
    %c0_i32_0 = arith.constant 0 : i32
    %c0_i32_1 = arith.constant 0 : i32
    return %c0_i32, %c0_i32_0 : i32, i32
  }
  func.func @transform_1(%arg0: i32, %arg1: i32) -> (i32, i32) {
    %c0_i32 = arith.constant 0 : i32
    %c0_i32_0 = arith.constant 0 : i32
    %c0_i32_1 = arith.constant 0 : i32
    return %c0_i32, %c0_i32_0 : i32, i32
  }
  func.func @transform_2(%arg0: i32, %arg1: i32) -> (i32, i32, i32) {
    %c0_i32 = arith.constant 0 : i32
    %c0_i32_0 = arith.constant 0 : i32
    return %arg0, %c0_i32, %arg1 : i32, i32, i32
  }
  func.func @transform_3(%arg0: i32, %arg1: i32) -> (i32, i32, i32) {
    %c0_i32 = arith.constant 0 : i32
    %c0_i32_0 = arith.constant 0 : i32
    return %arg0, %c0_i32, %arg1 : i32, i32, i32
  }
}

</mosaic_0001>

<bundles_post_ra>
// kernel: focus_forward.1
= control target key start
LH: loop header
LB: loop body
LE: loop exit
PB: predicated region body
PF: predicated region fallthrough
CT: control target
= control target key end

     0   :  { %s570_s12 = smov 0   ;;  %s572_s13 = smov 0   ;;  %s647_s0 = inlined_call_operand.vmem [shape: bf16[32,16], index: 0, kind: input, shape index: {}]   ;;  %s648_s1 = inlined_call_operand.vmem [shape: f32[32,1], index: 1, kind: input, shape index: {}]   ;;  %s649_s2 = inlined_call_operand.vmem [shape: bf16[2,16,64], index: 2, kind: input, shape index: {}]   ;;  %s650_s3 = inlined_call_operand.vmem [shape: bf16[2,32,64], index: 3, kind: output, shape index: {}]  }
   0x1   :  { %s574_s14 = smov 0  }
   0x2 LB: > { %s25_s15 = sadd.s32 1, %s543_s13  ;;  %p451_p0 = scmp.ge.s32.totalorder %s547_s14, 1  ;;  %s547_s14 = sphi %s574_s14, %s13_s14   ;;  %s543_s13 = sphi %s572_s13, %s652_s13   ;;  %s539_s12 = sphi %s570_s12, %s651_s12  }
   0x3   : > { %p27_p1 = scmp.ge.s32.totalorder %s25_s15, 2  ;;  %p156_p2 = scmp.lt.s32.totalorder %s547_s14, 3 }
   0x5   : > { %s654_s15 = smov (%p27_p1, %s25_s15), 0  ;;  %p157_p3 = pnand %p451_p0, %p156_p2 }
   0x6   : > { %p186_p4 = scmp.lt.s32.totalorder (!%p157_p3), %s539_s12, 1 }
   0x7   : > { %160 = sbr.rel (%p157_p3) target bundleno = 191 (0xbf), region = 32 }
   0xc   : > { %v211_v0 = vld [vmem:[%s648_s1 + $0x10] sm:$0xff]  ;;  %v549_v1 = vmov 0   ;;  %v209_v2 = vld [vmem:[%s648_s1] sm:$0xff]  ;;  %s656_s12 = smov (!%p186_p4, %s539_s12), 1  ;;  %v479_v5 = vld [vmem:[%s647_s0 + $0x8] sm:$0xff]  ;;  %vm249_vm0 = vcmask 130048  }
   0xd   : > { %508 = vset.pattern.permute.xlu1 %v549_v1  ;;  %507 = vset.pattern.permute.xlu0 %v549_v1  ;;  %s476_s20 = sshll.u32 %s656_s12, 3  ;;  %v478_v4 = vld [vmem:[%s647_s0] sm:$0xff]  ;;  %v212_v6 = vld [vmem:[%s648_s1 + $0x18] sm:$0xff]  ;;  %v210_v7 = vld [vmem:[%s648_s1 + $0x8] sm:$0xff]  ;;  %s477_s5 = sshll.u32 %s656_s12, 4  ;;  %vm359_vm9 = vcmask 519168  }
   0xe   : > { %225 = vperm.xlu1 %508, %v211_v0   ;;  %215 = vperm.xlu0 %507, %v209_v2   ;;  %s193_s23 = scalar_lea.vmem %s649_s2, %s476_s20  ;;  %s625_s8 = scalar_lea.vmem %s650_s3, %s477_s5 }
   0xf   : > { %v480_v3 = vld [vmem:[%s193_s23] sm:$0xff] }
  0x10   : > { %263 = vmatpush.bf16.msra.mxu0 %v480_v3  ;;  %481 = vmatpush.bf16.msra.mxu1 %v480_v3 }
  0x13   : > { %468 = vmatmul.msk.bf16.vlgmr.msra.gmra.mxu0 %vm249_vm0, %v478_v4  ;;  %469 = vmatmul.msk.bf16.vlgmr.msra.gmra.mxu1 %vm249_vm0, %v479_v5 }
  0x16   : > { %230 = vperm.xlu1 %508, %v212_v6   ;;  %220 = vperm.xlu0 %507, %v210_v7  }
  0x80   : > { %v226_v8 = vpop.permute.xlu1 %225  ;;  %v216_v9 = vpop.permute.xlu0 %215 }
  0x88   : > { %v231_v16 = vpop.permute.xlu1 %230  ;;  %v221_v17 = vpop.permute.xlu0 %220 }
  0x90   : > { %v265_v10 = vpop.f32.mrf.mxu0  ;;  %v270_v11 = vpop.f32.mrf.mxu1 }
  0x91   : > { %v266_v12 = vadd.f32 %v265_v10, %v216_v9  ;;  %v612_v13 = vadd.f32 %v270_v11, %v226_v8 }
  0x93   : > { %v470_v14 = vmul.f32 -1.442695, %v266_v12  ;;  %v472_v15 = vmul.f32 -1.442695, %v612_v13 }
  0x95   : > { %509 = vpow2.f32 %v470_v14 }
  0x96   : > { %511 = vpow2.f32 %v472_v15 }
  0x98   : > { %v267_v18 = vpop.f32.mrf.mxu0  ;;  %v272_v19 = vpop.f32.mrf.mxu1 }
  0x99   : > { %v615_v20 = vadd.f32 %v267_v18, %v221_v17  ;;  %v617_v21 = vadd.f32 %v272_v19, %v231_v16 }
  0x9b   : > { %v510_v22 = vpop.eup %509  ;;  %v471_v23 = vmul.f32 -1.442695, %v615_v20  ;;  %v473_v26 = vmul.f32 -1.442695, %v617_v21 }
  0x9c   : > { %v512_v24 = vpop.eup %511  ;;  %v287_v25 = vadd.f32 1.0, %v510_v22 }
  0x9d   : > { %v289_v27 = vadd.f32 1.0, %v512_v24  ;;  %513 = vpow2.f32 %v471_v23 }
  0x9e   : > { %515 = vrcp.f32 %v287_v25  ;;  %v300_v37 = vand.u32 2147483647, %v287_v25  ;;  %v302_v38 = vand.u32 2147483648, %v287_v25  ;;  %vm296_vm3 = vweird.f32 %v287_v25 }
  0x9f   : > { %517 = vrcp.f32 %v289_v27  ;;  %v332_v41 = vand.u32 2147483648, %v289_v27  ;;  %v330_v43 = vand.u32 2147483647, %v289_v27  ;;  %vm326_vm5 = vweird.f32 %v289_v27 }
  0xa0   : > { %519 = vpow2.f32 %v473_v26  ;;  %v303_v46 = vor.u32 1.1754944e-38, %v302_v38  ;;  %vm301_vm6 = vcmp.eq.f32.partialorder %v300_v37, 8.507059e+37 }
  0xa1   : > { %v333_v49 = vor.u32 1.1754944e-38, %v332_v41  ;;  %vm331_vm8 = vcmp.eq.f32.partialorder %v330_v43, 8.507059e+37 }
  0xa3   : > { %v514_v28 = vpop.eup %513 }
  0xa4   : > { %v516_v29 = vpop.eup %515  ;;  %v288_v30 = vadd.f32 1.0, %v514_v28 }
  0xa5   : > { %v518_v31 = vpop.eup %517  ;;  %v292_v32 = vmul.f32 %v516_v29, %v287_v25  ;;  %vm297_vm1 = vweird.f32 %v516_v29 }
  0xa6   : > { %v520_v33 = vpop.eup %519  ;;  %v322_v34 = vmul.f32 %v518_v31, %v289_v27  ;;  %521 = vrcp.f32 %v288_v30  ;;  %vm327_vm2 = vweird.f32 %v518_v31  ;;  %vm298_vm4 = vmor %vm296_vm3, %vm297_vm1  ;;  %v317_v58 = vand.u32 2147483648, %v288_v30 }
  0xa7   : > { %v293_v35 = vsub.f32 1.0, %v292_v32  ;;  %v290_v36 = vadd.f32 1.0, %v520_v33  ;;  %vm328_vm7 = vmor %vm326_vm5, %vm327_vm2  ;;  %v315_v62 = vand.u32 2147483647, %v288_v30  ;;  %vm311_vm11 = vweird.f32 %v288_v30 }
  0xa8   : > { %v323_v39 = vsub.f32 1.0, %v322_v34  ;;  %v318_v3 = vor.u32 1.1754944e-38, %v317_v58 }
  0xa9   : > { %v294_v40 = vmul.f32 %v516_v29, %v293_v35  ;;  %523 = vrcp.f32 %v290_v36  ;;  %v347_v2 = vand.u32 2147483648, %v290_v36  ;;  %v345_v5 = vand.u32 2147483647, %v290_v36 }
  0xaa   : > { %v324_v42 = vmul.f32 %v518_v31, %v323_v39  ;;  %vm316_vm14 = vcmp.eq.f32.partialorder %v315_v62, 8.507059e+37  ;;  %vm341_vm15 = vweird.f32 %v290_v36 }
  0xab   : > { %v295_v44 = vadd.f32 %v516_v29, %v294_v40  ;;  %v348_v10 = vor.u32 1.1754944e-38, %v347_v2  ;;  %vm346_vm1 = vcmp.eq.f32.partialorder %v345_v5, 8.507059e+37 }
  0xac   : > { %v522_v45 = vpop.eup %521  ;;  %v325_v47 = vadd.f32 %v518_v31, %v324_v42 }
  0xad   : > { %v299_v48 = vsel %vm298_vm4, %v516_v29, %v295_v44  ;;  %v307_v50 = vmul.f32 %v522_v45, %v288_v30  ;;  %vm312_vm10 = vweird.f32 %v522_v45 }
  0xae   : > { %v304_v51 = vsel %vm301_vm6, %v303_v46, %v299_v48  ;;  %v329_v52 = vsel %vm328_vm7, %v518_v31, %v325_v47  ;;  %vm313_vm12 = vmor %vm311_vm11, %vm312_vm10 }
  0xaf   : > { %v524_v53 = vpop.eup %523  ;;  %v351_v54 = vmul.f32 %v304_v51, %v266_v12  ;;  %v334_v55 = vsel %vm331_vm8, %v333_v49, %v329_v52  ;;  %v308_v56 = vsub.f32 1.0, %v307_v50 }
  0xb0   : > { %v353_v57 = vmul.f32 %v334_v55, %v612_v13  ;;  %v337_v59 = vmul.f32 %v524_v53, %v290_v36  ;;  %vm342_vm13 = vweird.f32 %v524_v53 }
  0xb1   : > { %v355_v60 = vpack.c.bf16 %v351_v54, %v351_v54  ;;  %v309_v61 = vmul.f32 %v522_v45, %v308_v56  ;;  %vm343_vm0 = vmor %vm341_vm15, %vm342_vm13 }
  0xb2   : > { %v357_v63 = vpack.c.bf16 %v353_v57, %v353_v57  ;;  %v338_v0 = vsub.f32 1.0, %v337_v59 }
  0xb3   : > { %360 = vst.msk [vmem:[%s625_s8] sm:$0xf] %vm359_vm9, %v355_v60  ;;  %v310_v1 = vadd.f32 %v522_v45, %v309_v61 }
  0xb4   : > { %362 = vst.msk [vmem:[%s625_s8 + $0x8] sm:$0xf] %vm359_vm9, %v357_v63  ;;  %v339_v4 = vmul.f32 %v524_v53, %v338_v0 }
  0xb5   : > { %v314_v6 = vsel %vm313_vm12, %v522_v45, %v310_v1 }
  0xb6   : > { %v319_v7 = vsel %vm316_vm14, %v318_v3, %v314_v6  ;;  %v340_v8 = vadd.f32 %v524_v53, %v339_v4 }
  0xb7   : > { %v352_v9 = vmul.f32 %v319_v7, %v615_v20 }
  0xb8   : > { %v344_v11 = vsel %vm343_vm0, %v524_v53, %v340_v8 }
  0xb9   : > { %v356_v12 = vpack.c.bf16 %v352_v9, %v352_v9  ;;  %v349_v13 = vsel %vm346_vm1, %v348_v10, %v344_v11 }
  0xba   : > { %v354_v14 = vmul.f32 %v349_v13, %v617_v21 }
  0xbb   : > { %361 = vst.msk [vmem:[%s625_s8 + $0x4] sm:$0xf] %vm359_vm9, %v356_v12 }
  0xbc   : > { %v358_v15 = vpack.c.bf16 %v354_v14, %v354_v14 }
  0xbe   : > { %363 = vst.msk [vmem:[%s625_s8 + $0xc] sm:$0xf] %vm359_vm9, %v358_v15 }
  0xbf PF: > { %s13_s14 = sadd.s32 1, %s547_s14   ;;  %s651_s12 = smov %s543_s13 }
  0xc0   : > { %p10_p5 = scmp.ge.s32.totalorder %s13_s14, 4   ;;  %s652_s13 = smov %s654_s15 }
  0xc2   :  { %12 = sbr.rel (!%p10_p5) target bundleno = 2 (0x2), region = 62 }

</bundles_post_ra>
